<compile_context>
chip_gen: v5e
topology: v5e:2x2
jax: 0.10.0
libtpu: 0.0.40
codegen_flags: <defaults>
</compile_context>

<pallas_src>
import jax
import jax.numpy as jnp
from jax.experimental import pallas as pl
from jax.experimental.pallas import tpu as pltpu

MASK_P = 0.2
NUM_UNITS = 64
SIZE = 16
DIM_INPUTS = SIZE * SIZE          # 256
ENC_HIDDEN = 128
HIP_HIDDEN = NUM_UNITS * 4        # 256


# ----------------------------- fused Pallas kernel ---------------------------

def fused_model_kernel(x_ref, n_ref, u_ref,
                       ew1_ref, eb1_ref, ew2_ref, eb2_ref,
                       wf_ref, bf_ref, hw2_ref, hb2_ref,
                       out_ref):
    """Whole forward pass for one batch tile of TB rows.

    x_ref : (TB, 256) f32      input rows
    n_ref : (2, TB, 256) f32   0.1 * N(0,1) noise for the two encoder passes
    u_ref : (TB, 64) f32       U(0,1) draws for the Bernoulli mask
    weights are bf16 (MXU path), biases f32; accumulation is f32.
    Output: lane-dense (TB, 256) packed slab [y1 | w | mask | y2].
    """
    x = x_ref[...]                                   # (TB, 256) f32
    tb = x.shape[0]
    n = n_ref[...]                                   # (2, TB, 256) f32

    # Both encoder passes stacked into one (2*TB, 256) MXU operand; x is added
    # into each noise half directly (no duplicated-x buffer).
    xn = jnp.concatenate([x + n[0], x + n[1]], axis=0).astype(jnp.bfloat16)

    # ---- encoder: Linear(256->128) -> ReLU -> Linear(128->64) ----
    h = jnp.dot(xn, ew1_ref[...], preferred_element_type=jnp.float32) + eb1_ref[...]
    h = jnp.maximum(h, 0.0)
    hb = h.astype(jnp.bfloat16)                      # (2*TB, 128)

    y = jnp.dot(hb, ew2_ref[...], preferred_element_type=jnp.float32) + eb2_ref[...]
    y1 = y[:tb]                                      # (TB, 64)
    y2 = y[tb:]                                      # (TB, 64)

    # ---- hippocampus: layer-1 folded into encoder layer-2 (W_fused = ew2@hw1) ----
    hh = jnp.dot(hb[:tb], wf_ref[...], preferred_element_type=jnp.float32) + bf_ref[...]
    hh = jnp.maximum(hh, 0.0)                        # (TB, 256)
    logits = (jnp.dot(hh.astype(jnp.bfloat16), hw2_ref[...],
                      preferred_element_type=jnp.float32) + hb2_ref[...])

    # softmax (exact division for parity with torch.softmax)
    m = jnp.max(logits, axis=-1, keepdims=True)
    e = jnp.exp(logits - m)
    w = e / jnp.sum(e, axis=-1, keepdims=True)

    # Bernoulli(1 - MASK_P) mask from prefetched uniforms (no rescale)
    mask = (u_ref[...] < (1.0 - MASK_P)).astype(jnp.float32)

    # lane-dense packed output: [y1 | w | mask | y2]  -> (TB, 4*64 = 256)
    out_ref[...] = jnp.concatenate([y1, w, mask, y2], axis=-1)


# ------------------------------- JAX wrapper ---------------------------------

def _round_up(v, m):
    return ((v + m - 1) // m) * m


@jax.jit
def model_forward(params, x, key):
    """Mirrors Model.forward: returns ((y1, w), y2, mask)."""
    x_flat = x.reshape(-1, DIM_INPUTS).astype(jnp.float32)
    B = x_flat.shape[0]

    # batch tile: multiple of 8, capped at 256 rows (comfortably inside the
    # 32 MiB scoped / 64 MiB physical VMEM budget on v7x even double-buffered)
    B8 = _round_up(B, 8)
    TB = min(B8, 256)
    B_pad = _round_up(B8, TB)
    grid = (B_pad // TB,)

    if B_pad != B:
        x_flat = jnp.pad(x_flat, ((0, B_pad - B), (0, 0)))

    # host/XLA-side randomness (portable; see TODO about on-chip PRNG)
    k_noise, k_mask = jax.random.split(key)
    noise = 0.1 * jax.random.normal(k_noise, (2, B_pad, DIM_INPUTS), jnp.float32)
    unif = jax.random.uniform(k_mask, (B_pad, NUM_UNITS), jnp.float32)

    # bf16 MXU operands (f32 accumulation stays inside the kernel)
    ew1 = params["enc_w1"].astype(jnp.bfloat16)
    ew2 = params["enc_w2"].astype(jnp.bfloat16)
    hw2 = params["hip_w2"].astype(jnp.bfloat16)
    # fold hippocampus layer-1 into encoder layer-2 (done once, outside kernel)
    w_fused = jnp.dot(params["enc_w2"], params["hip_w1"]).astype(jnp.bfloat16)   # (128, 256)
    b_fused = jnp.dot(params["enc_b2"], params["hip_w1"]) + params["hip_b1"]     # (1, 256) f32

    def _resident(arr):  # weights/biases: same block every grid step -> stay in VMEM
        return pl.BlockSpec(arr.shape, lambda i: (0, 0))

    packed = pl.pallas_call(
        fused_model_kernel,
        out_shape=jax.ShapeDtypeStruct((B_pad, 4 * NUM_UNITS), jnp.float32),
        grid=grid,
        in_specs=[
            pl.BlockSpec((TB, DIM_INPUTS), lambda i: (i, 0)),        # x tile
            pl.BlockSpec((2, TB, DIM_INPUTS), lambda i: (0, i, 0)),  # noise tile
            pl.BlockSpec((TB, NUM_UNITS), lambda i: (i, 0)),         # uniforms tile
            _resident(ew1), _resident(params["enc_b1"]),
            _resident(ew2), _resident(params["enc_b2"]),
            _resident(w_fused), _resident(b_fused),
            _resident(hw2), _resident(params["hip_b2"]),
        ],
        out_specs=pl.BlockSpec((TB, 4 * NUM_UNITS), lambda i: (i, 0)),
        compiler_params=pltpu.CompilerParams(
            dimension_semantics=("parallel",)),      # v7x megacore split; no-op on 1-TC chips
    )(x_flat, noise, unif,
      ew1, params["enc_b1"], ew2, params["enc_b2"],
      w_fused, b_fused, hw2, params["hip_b2"])

    packed = packed[:B]
    y1 = packed[:, 0 * NUM_UNITS:1 * NUM_UNITS]
    w = packed[:, 1 * NUM_UNITS:2 * NUM_UNITS]
    mask = packed[:, 2 * NUM_UNITS:3 * NUM_UNITS]
    y2 = packed[:, 3 * NUM_UNITS:4 * NUM_UNITS]
    return (y1, w), y2, mask


def init_params(key):
    ks = jax.random.split(key, 4)
    scale = 0.05
    return {
        "enc_w1": scale * jax.random.normal(ks[0], (DIM_INPUTS, ENC_HIDDEN), jnp.float32),
        "enc_b1": jnp.zeros((1, ENC_HIDDEN), jnp.float32),
        "enc_w2": scale * jax.random.normal(ks[1], (ENC_HIDDEN, NUM_UNITS), jnp.float32),
        "enc_b2": jnp.zeros((1, NUM_UNITS), jnp.float32),
        "hip_w1": scale * jax.random.normal(ks[2], (NUM_UNITS, HIP_HIDDEN), jnp.float32),
        "hip_b1": jnp.zeros((1, HIP_HIDDEN), jnp.float32),
        "hip_w2": scale * jax.random.normal(ks[3], (HIP_HIDDEN, NUM_UNITS), jnp.float32),
        "hip_b2": jnp.zeros((1, NUM_UNITS), jnp.float32),
        # unused in forward (matches the reference: nn.Parameter(torch.ones(NUM_UNITS)))
        "temperature": jnp.ones((NUM_UNITS,), jnp.float32),
    }


# ----------------------------------- main ------------------------------------

if __name__ == "__main__":
    key = jax.random.PRNGKey(0)
    kp, kx, kn = jax.random.split(key, 3)

    params = init_params(kp)
    # small batch of SIZE x SIZE "images": (2, 4, 16, 16) -> flattens to (8, 256)
    x = jax.random.normal(kx, (2, 4, SIZE, SIZE), jnp.float32)

    (y1, w), y2, mask = model_forward(params, x, kn)
    jax.block_until_ready((y1, w, y2, mask))

    B = 2 * 4
    assert y1.shape == (B, NUM_UNITS)
    assert w.shape == (B, NUM_UNITS)
    assert y2.shape == (B, NUM_UNITS)
    assert mask.shape == (B, NUM_UNITS)
    # softmax rows sum to ~1, mask is {0,1}
    assert bool(jnp.all(jnp.abs(jnp.sum(w, axis=-1) - 1.0) < 1e-2))
    assert bool(jnp.all((mask == 0.0) | (mask == 1.0)))
    print("KERNEL_OK")
</pallas_src>

<mosaic_0001>
module attributes {stable_mosaic.version = 11 : i64} {
  func.func @fused_model_kernel(%arg0: i32, %arg1: memref<8x256xf32, #tpu.memory_space<vmem>>, %arg2: memref<2x8x256xf32, #tpu.memory_space<vmem>>, %arg3: memref<8x64xf32, #tpu.memory_space<vmem>>, %arg4: memref<256x128xbf16, #tpu.memory_space<vmem>>, %arg5: memref<1x128xf32, #tpu.memory_space<vmem>>, %arg6: memref<128x64xbf16, #tpu.memory_space<vmem>>, %arg7: memref<1x64xf32, #tpu.memory_space<vmem>>, %arg8: memref<128x256xbf16, #tpu.memory_space<vmem>>, %arg9: memref<1x256xf32, #tpu.memory_space<vmem>>, %arg10: memref<256x64xbf16, #tpu.memory_space<vmem>>, %arg11: memref<1x64xf32, #tpu.memory_space<vmem>>, %arg12: memref<8x256xf32, #tpu.memory_space<vmem>>) attributes {dimension_semantics = [#tpu.dimension_semantics<parallel>], iteration_bounds = array<i64: 1>, scalar_prefetch = 0 : i64, scratch_operands = 0 : i64, tpu.core_type = #tpu.core_type<tc>, window_params = [{transform_indices = @transform_0, window_bounds = array<i64: 8, 256>}, {transform_indices = @transform_1, window_bounds = array<i64: 2, 8, 256>}, {transform_indices = @transform_2, window_bounds = array<i64: 8, 64>}, {pipeline_mode = #tpu.pipeline_mode<synchronous>, transform_indices = @transform_3, window_bounds = array<i64: 256, 128>}, {pipeline_mode = #tpu.pipeline_mode<synchronous>, transform_indices = @transform_4, window_bounds = array<i64: 1, 128>}, {pipeline_mode = #tpu.pipeline_mode<synchronous>, transform_indices = @transform_5, window_bounds = array<i64: 128, 64>}, {pipeline_mode = #tpu.pipeline_mode<synchronous>, transform_indices = @transform_6, window_bounds = array<i64: 1, 64>}, {pipeline_mode = #tpu.pipeline_mode<synchronous>, transform_indices = @transform_7, window_bounds = array<i64: 128, 256>}, {pipeline_mode = #tpu.pipeline_mode<synchronous>, transform_indices = @transform_8, window_bounds = array<i64: 1, 256>}, {pipeline_mode = #tpu.pipeline_mode<synchronous>, transform_indices = @transform_9, window_bounds = array<i64: 256, 64>}, {pipeline_mode = #tpu.pipeline_mode<synchronous>, transform_indices = @transform_10, window_bounds = array<i64: 1, 64>}, {transform_indices = @transform_11, window_bounds = array<i64: 8, 256>}]} {
    %c0 = arith.constant 0 : index
    %c0_0 = arith.constant 0 : index
    %0 = vector.load %arg1[%c0, %c0_0] : memref<8x256xf32, #tpu.memory_space<vmem>>, vector<8x256xf32>
    %c0_1 = arith.constant 0 : index
    %c0_2 = arith.constant 0 : index
    %c0_3 = arith.constant 0 : index
    %1 = vector.load %arg2[%c0_1, %c0_2, %c0_3] : memref<2x8x256xf32, #tpu.memory_space<vmem>>, vector<2x8x256xf32>
    %2 = vector.extract_strided_slice %1 {offsets = [0, 0, 0], sizes = [1, 8, 256], strides = [1, 1, 1]} : vector<2x8x256xf32> to vector<1x8x256xf32>
    %3 = vector.shape_cast %2 : vector<1x8x256xf32> to vector<8x256xf32>
    %4 = arith.addf %0, %3 : vector<8x256xf32>
    %5 = vector.extract_strided_slice %1 {offsets = [1, 0, 0], sizes = [1, 8, 256], strides = [1, 1, 1]} : vector<2x8x256xf32> to vector<1x8x256xf32>
    %6 = vector.shape_cast %5 : vector<1x8x256xf32> to vector<8x256xf32>
    %7 = arith.addf %0, %6 : vector<8x256xf32>
    %8 = tpu.concatenate %4, %7 in 0 : vector<8x256xf32>, vector<8x256xf32> -> vector<16x256xf32>
    %9 = arith.truncf %8 : vector<16x256xf32> to vector<16x256xbf16>
    %c0_4 = arith.constant 0 : index
    %c0_5 = arith.constant 0 : index
    %10 = vector.load %arg4[%c0_4, %c0_5] : memref<256x128xbf16, #tpu.memory_space<vmem>>, vector<256x128xbf16>
    %cst = arith.constant dense<0.000000e+00> : vector<16x128xf32>
    %11 = tpu.matmul %9, %10, %cst {dimension_numbers = #tpu.dot_dimension_numbers<[1], [0], [0], [1], [0, 0, 1, 1], [], []>} : vector<16x256xbf16>, vector<256x128xbf16>, vector<16x128xf32> -> vector<16x128xf32>
    %c0_6 = arith.constant 0 : index
    %c0_7 = arith.constant 0 : index
    %12 = vector.load %arg5[%c0_6, %c0_7] : memref<1x128xf32, #tpu.memory_space<vmem>>, vector<1x128xf32>
    %13 = vector.broadcast %12 : vector<1x128xf32> to vector<16x128xf32>
    %14 = arith.addf %11, %13 : vector<16x128xf32>
    %cst_8 = arith.constant 0.000000e+00 : f32
    %15 = vector.broadcast %cst_8 : f32 to vector<16x128xf32>
    %16 = arith.maximumf %14, %15 : vector<16x128xf32>
    %17 = arith.truncf %16 : vector<16x128xf32> to vector<16x128xbf16>
    %c0_9 = arith.constant 0 : index
    %c0_10 = arith.constant 0 : index
    %18 = vector.load %arg6[%c0_9, %c0_10] : memref<128x64xbf16, #tpu.memory_space<vmem>>, vector<128x64xbf16>
    %cst_11 = arith.constant dense<0.000000e+00> : vector<16x64xf32>
    %19 = tpu.matmul %17, %18, %cst_11 {dimension_numbers = #tpu.dot_dimension_numbers<[1], [0], [0], [1], [0, 0, 1, 1], [], []>} : vector<16x128xbf16>, vector<128x64xbf16>, vector<16x64xf32> -> vector<16x64xf32>
    %c0_12 = arith.constant 0 : index
    %c0_13 = arith.constant 0 : index
    %20 = vector.load %arg7[%c0_12, %c0_13] : memref<1x64xf32, #tpu.memory_space<vmem>>, vector<1x64xf32>
    %21 = vector.broadcast %20 : vector<1x64xf32> to vector<16x64xf32>
    %22 = arith.addf %19, %21 : vector<16x64xf32>
    %23 = vector.extract_strided_slice %22 {offsets = [0, 0], sizes = [8, 64], strides = [1, 1]} : vector<16x64xf32> to vector<8x64xf32>
    %24 = vector.extract_strided_slice %22 {offsets = [8, 0], sizes = [8, 64], strides = [1, 1]} : vector<16x64xf32> to vector<8x64xf32>
    %25 = vector.extract_strided_slice %17 {offsets = [0, 0], sizes = [8, 128], strides = [1, 1]} : vector<16x128xbf16> to vector<8x128xbf16>
    %c0_14 = arith.constant 0 : index
    %c0_15 = arith.constant 0 : index
    %26 = vector.load %arg8[%c0_14, %c0_15] : memref<128x256xbf16, #tpu.memory_space<vmem>>, vector<128x256xbf16>
    %cst_16 = arith.constant dense<0.000000e+00> : vector<8x256xf32>
    %27 = tpu.matmul %25, %26, %cst_16 {dimension_numbers = #tpu.dot_dimension_numbers<[1], [0], [0], [1], [0, 0, 1, 1], [], []>} : vector<8x128xbf16>, vector<128x256xbf16>, vector<8x256xf32> -> vector<8x256xf32>
    %c0_17 = arith.constant 0 : index
    %c0_18 = arith.constant 0 : index
    %28 = vector.load %arg9[%c0_17, %c0_18] : memref<1x256xf32, #tpu.memory_space<vmem>>, vector<1x256xf32>
    %29 = vector.broadcast %28 : vector<1x256xf32> to vector<8x256xf32>
    %30 = arith.addf %27, %29 : vector<8x256xf32>
    %cst_19 = arith.constant 0.000000e+00 : f32
    %31 = vector.broadcast %cst_19 : f32 to vector<8x256xf32>
    %32 = arith.maximumf %30, %31 : vector<8x256xf32>
    %33 = arith.truncf %32 : vector<8x256xf32> to vector<8x256xbf16>
    %c0_20 = arith.constant 0 : index
    %c0_21 = arith.constant 0 : index
    %34 = vector.load %arg10[%c0_20, %c0_21] : memref<256x64xbf16, #tpu.memory_space<vmem>>, vector<256x64xbf16>
    %cst_22 = arith.constant dense<0.000000e+00> : vector<8x64xf32>
    %35 = tpu.matmul %33, %34, %cst_22 {dimension_numbers = #tpu.dot_dimension_numbers<[1], [0], [0], [1], [0, 0, 1, 1], [], []>} : vector<8x256xbf16>, vector<256x64xbf16>, vector<8x64xf32> -> vector<8x64xf32>
    %c0_23 = arith.constant 0 : index
    %c0_24 = arith.constant 0 : index
    %36 = vector.load %arg11[%c0_23, %c0_24] : memref<1x64xf32, #tpu.memory_space<vmem>>, vector<1x64xf32>
    %37 = vector.broadcast %36 : vector<1x64xf32> to vector<8x64xf32>
    %38 = arith.addf %35, %37 : vector<8x64xf32>
    %cst_25 = arith.constant dense<0xFF800000> : vector<8xf32>
    %39 = vector.multi_reduction <maximumf>, %38, %cst_25 [1] : vector<8x64xf32> to vector<8xf32>
    %40 = vector.shape_cast %39 : vector<8xf32> to vector<8x1xf32>
    %41 = vector.broadcast %40 : vector<8x1xf32> to vector<8x64xf32>
    %42 = arith.subf %38, %41 : vector<8x64xf32>
    %43 = math.exp %42 : vector<8x64xf32>
    %cst_26 = arith.constant dense<0.000000e+00> : vector<8xf32>
    %44 = vector.multi_reduction <add>, %43, %cst_26 [1] : vector<8x64xf32> to vector<8xf32>
    %45 = vector.shape_cast %44 : vector<8xf32> to vector<8x1xf32>
    %46 = vector.broadcast %45 : vector<8x1xf32> to vector<8x64xf32>
    %47 = arith.divf %43, %46 : vector<8x64xf32>
    %c0_27 = arith.constant 0 : index
    %c0_28 = arith.constant 0 : index
    %48 = vector.load %arg3[%c0_27, %c0_28] : memref<8x64xf32, #tpu.memory_space<vmem>>, vector<8x64xf32>
    %cst_29 = arith.constant 8.000000e-01 : f32
    %49 = vector.broadcast %cst_29 : f32 to vector<8x64xf32>
    %50 = arith.cmpf olt, %48, %49 : vector<8x64xf32>
    %51 = arith.extui %50 : vector<8x64xi1> to vector<8x64xi32>
    %52 = arith.sitofp %51 : vector<8x64xi32> to vector<8x64xf32>
    %53 = tpu.concatenate %23, %47, %52, %24 in 1 : vector<8x64xf32>, vector<8x64xf32>, vector<8x64xf32>, vector<8x64xf32> -> vector<8x256xf32>
    %c0_30 = arith.constant 0 : index
    %c0_31 = arith.constant 0 : index
    %54 = vector.load %arg12[%c0_30, %c0_31] : memref<8x256xf32, #tpu.memory_space<vmem>>, vector<8x256xf32>
    tpu.vector_store %arg12[%c0_30, %c0_31], %53 {strides = array<i32>} : memref<8x256xf32, #tpu.memory_space<vmem>>, vector<8x256xf32>,
    return
  }
  func.func @transform_0(%arg0: i32) -> (i32, i32) {
    %c0_i32 = arith.constant 0 : i32
    %c0_i32_0 = arith.constant 0 : i32
    return %arg0, %c0_i32 : i32, i32
  }
  func.func @transform_1(%arg0: i32) -> (i32, i32, i32) {
    %c0_i32 = arith.constant 0 : i32
    %c0_i32_0 = arith.constant 0 : i32
    %c0_i32_1 = arith.constant 0 : i32
    return %c0_i32, %arg0, %c0_i32_0 : i32, i32, i32
  }
  func.func @transform_2(%arg0: i32) -> (i32, i32) {
    %c0_i32 = arith.constant 0 : i32
    %c0_i32_0 = arith.constant 0 : i32
    return %arg0, %c0_i32 : i32, i32
  }
  func.func @transform_3(%arg0: i32) -> (i32, i32) {
    %c0_i32 = arith.constant 0 : i32
    %c0_i32_0 = arith.constant 0 : i32
    %c0_i32_1 = arith.constant 0 : i32
    return %c0_i32, %c0_i32_0 : i32, i32
  }
  func.func @transform_4(%arg0: i32) -> (i32, i32) {
    %c0_i32 = arith.constant 0 : i32
    %c0_i32_0 = arith.constant 0 : i32
    %c0_i32_1 = arith.constant 0 : i32
    return %c0_i32, %c0_i32_0 : i32, i32
  }
  func.func @transform_5(%arg0: i32) -> (i32, i32) {
    %c0_i32 = arith.constant 0 : i32
    %c0_i32_0 = arith.constant 0 : i32
    %c0_i32_1 = arith.constant 0 : i32
    return %c0_i32, %c0_i32_0 : i32, i32
  }
  func.func @transform_6(%arg0: i32) -> (i32, i32) {
    %c0_i32 = arith.constant 0 : i32
    %c0_i32_0 = arith.constant 0 : i32
    %c0_i32_1 = arith.constant 0 : i32
    return %c0_i32, %c0_i32_0 : i32, i32
  }
  func.func @transform_7(%arg0: i32) -> (i32, i32) {
    %c0_i32 = arith.constant 0 : i32
    %c0_i32_0 = arith.constant 0 : i32
    %c0_i32_1 = arith.constant 0 : i32
    return %c0_i32, %c0_i32_0 : i32, i32
  }
  func.func @transform_8(%arg0: i32) -> (i32, i32) {
    %c0_i32 = arith.constant 0 : i32
    %c0_i32_0 = arith.constant 0 : i32
    %c0_i32_1 = arith.constant 0 : i32
    return %c0_i32, %c0_i32_0 : i32, i32
  }
  func.func @transform_9(%arg0: i32) -> (i32, i32) {
    %c0_i32 = arith.constant 0 : i32
    %c0_i32_0 = arith.constant 0 : i32
    %c0_i32_1 = arith.constant 0 : i32
    return %c0_i32, %c0_i32_0 : i32, i32
  }
  func.func @transform_10(%arg0: i32) -> (i32, i32) {
    %c0_i32 = arith.constant 0 : i32
    %c0_i32_0 = arith.constant 0 : i32
    %c0_i32_1 = arith.constant 0 : i32
    return %c0_i32, %c0_i32_0 : i32, i32
  }
  func.func @transform_11(%arg0: i32) -> (i32, i32) {
    %c0_i32 = arith.constant 0 : i32
    %c0_i32_0 = arith.constant 0 : i32
    return %arg0, %c0_i32 : i32, i32
  }
}

</mosaic_0001>

<bundles_post_ra>
// kernel: model_forward.3
= control target key start
LH: loop header
LB: loop body
LE: loop exit
PB: predicated region body
PF: predicated region fallthrough
CT: control target
= control target key end

     0   :  { %vm592_vm0 = vcmask 523264   ;;  %s1248_s3 = inlined_call_operand.vmem [shape: bf16[256,128], index: 3, kind: input, shape index: {}]   ;;  %s1249_s7 = inlined_call_operand.vmem [shape: bf16[128,256], index: 7, kind: input, shape index: {}]   ;;  %s1250_s5 = inlined_call_operand.vmem [shape: bf16[128,64], index: 5, kind: input, shape index: {}]   ;;  %s1251_s4 = inlined_call_operand.vmem [shape: f32[1,128], index: 4, kind: input, shape index: {}]   ;;  %s1252_s0 = inlined_call_operand.vmem [shape: f32[8,256], index: 0, kind: input, shape index: {}]   ;;  %s1253_s1 = inlined_call_operand.vmem [shape: f32[2,8,256], index: 1, kind: input, shape index: {}]   ;;  %s1254_s9 = inlined_call_operand.vmem [shape: bf16[256,64], index: 9, kind: input, shape index: {}]   ;;  %s1255_s6 = inlined_call_operand.vmem [shape: f32[1,64], index: 6, kind: input, shape index: {}]   ;;  %s1256_s10 = inlined_call_operand.vmem [shape: f32[1,64], index: 10, kind: input, shape index: {}]   ;;  %s1257_s8 = inlined_call_operand.vmem [shape: f32[1,256], index: 8, kind: input, shape index: {}]   ;;  %s1258_s2 = inlined_call_operand.vmem [shape: f32[8,64], index: 2, kind: input, shape index: {}]   ;;  %s1259_s11 = inlined_call_operand.vmem [shape: f32[8,256], index: 11, kind: output, shape index: {}]  }
   0x1   :  { %v869_v0 = vld [vmem:[%s1248_s3 + $0x38] sm:$0xff]  ;;  %v868_v2 = vld [vmem:[%s1248_s3 + $0x30] sm:$0xff]  ;;  %v867_v4 = vld [vmem:[%s1248_s3 + $0x28] sm:$0xff] }
   0x2   :  { %v877_v1 = vld [vmem:[%s1248_s3 + $0x78] sm:$0xff]  ;;  %182 = vmatpush.bf16.msra.mxu0 %v869_v0  ;;  %v876_v3 = vld [vmem:[%s1248_s3 + $0x70] sm:$0xff]  ;;  %v875_v5 = vld [vmem:[%s1248_s3 + $0x68] sm:$0xff] }
   0x3   :  { %196 = vmatpush.bf16.msra.mxu1 %v877_v1  ;;  %v791_v6 = vld [vmem:[%s1249_s7 + $0x70] sm:$0xf]  ;;  %v901_v7 = vld [vmem:[%s1249_s7 + $0x74] sm:$0xf0]  ;;  %v783_v9 = vld [vmem:[%s1249_s7 + $0x60] sm:$0xf] }
   0x4   :  { %v792_v8 = vor.u32 %v901_v7, %v791_v6  ;;  %v899_v10 = vld [vmem:[%s1249_s7 + $0x64] sm:$0xf0]  ;;  %v866_v11 = vld [vmem:[%s1248_s3 + $0x20] sm:$0xff]  ;;  %v885_v14 = vld [vmem:[%s1250_s5 + $0x38] sm:$0xff] }
   0x5   :  { %v874_v12 = vld [vmem:[%s1248_s3 + $0x60] sm:$0xff]  ;;  %v784_v13 = vor.u32 %v899_v10, %v783_v9  ;;  %v775_v15 = vld [vmem:[%s1249_s7 + $0x50] sm:$0xf]  ;;  %v897_v16 = vld [vmem:[%s1249_s7 + $0x54] sm:$0xf0]  ;;  %288 = vmatpush.bf16.msra.mxu2 %v885_v14 }
   0x6   :  { %183 = vmatpush.bf16.msra.mxu0 %v868_v2  ;;  %404 = vmatpush.bf16.msra.mxu3 %v792_v8  ;;  %v884_v17 = vld [vmem:[%s1250_s5 + $0x30] sm:$0xff]  ;;  %v865_v18 = vld [vmem:[%s1248_s3 + $0x18] sm:$0xff]  ;;  %v776_v20 = vor.u32 %v897_v16, %v775_v15  ;;  %v767_v21 = vld [vmem:[%s1249_s7 + $0x40] sm:$0xf] }
   0x7   :  { %197 = vmatpush.bf16.msra.mxu1 %v876_v3  ;;  %v873_v19 = vld [vmem:[%s1248_s3 + $0x58] sm:$0xff]  ;;  %v895_v22 = vld [vmem:[%s1249_s7 + $0x44] sm:$0xf0]  ;;  %v864_v24 = vld [vmem:[%s1248_s3 + $0x10] sm:$0xff] }
   0x8   :  { %v883_v23 = vld [vmem:[%s1250_s5 + $0x28] sm:$0xff]  ;;  %v872_v25 = vld [vmem:[%s1248_s3 + $0x50] sm:$0xff]  ;;  %v768_v26 = vor.u32 %v895_v22, %v767_v21  ;;  %v893_v30 = vld [vmem:[%s1249_s7 + $0x34] sm:$0xf0] }
   0x9   :  { %289 = vmatpush.bf16.msra.mxu2 %v884_v17  ;;  %v863_v27 = vld [vmem:[%s1248_s3 + $0x8] sm:$0xff]  ;;  %v759_v29 = vld [vmem:[%s1249_s7 + $0x30] sm:$0xf]  ;;  %v38_v31 = vld [vmem:[%s1252_s0] sm:$0xff] }
   0xa   :  { %184 = vmatpush.bf16.msra.mxu0 %v867_v4  ;;  %405 = vmatpush.bf16.msra.mxu3 %v784_v13  ;;  %v871_v28 = vld [vmem:[%s1248_s3 + $0x48] sm:$0xff]  ;;  %v40_v32 = vld [vmem:[%s1253_s1] sm:$0xff]  ;;  %v42_v33 = vld [vmem:[%s1253_s1 + $0x10] sm:$0xff]  ;;  %v760_v38 = vor.u32 %v893_v30, %v759_v29 }
   0xb   :  { %198 = vmatpush.bf16.msra.mxu1 %v875_v5  ;;  %v39_v34 = vld [vmem:[%s1252_s0 + $0x8] sm:$0xff]  ;;  %v43_v36 = vld [vmem:[%s1253_s1 + $0x18] sm:$0xff]  ;;  %v900_v37 = vld [vmem:[%s1249_s7 + $0x74] sm:$0xf]  ;;  %v44_v42 = vadd.f32 %v40_v32, %v38_v31  ;;  %v46_v43 = vadd.f32 %v42_v33, %v38_v31 }
   0xc   :  { %v41_v35 = vld [vmem:[%s1253_s1 + $0x8] sm:$0xff]  ;;  %v793_v39 = vld [vmem:[%s1249_s7 + $0x78] sm:$0xf0]  ;;  %v751_v40 = vld [vmem:[%s1249_s7 + $0x20] sm:$0xf]  ;;  %v47_v45 = vadd.f32 %v43_v36, %v39_v34 }
   0xd   :  { %290 = vmatpush.bf16.msra.mxu2 %v883_v23  ;;  %v891_v41 = vld [vmem:[%s1249_s7 + $0x24] sm:$0xf0]  ;;  %v45_v44 = vadd.f32 %v41_v35, %v39_v34  ;;  %v862_v46 = vld [vmem:[%s1248_s3] sm:$0xff]  ;;  %v796_v48 = vor.u32 %v900_v37, %v793_v39  ;;  %v785_v51 = vld [vmem:[%s1249_s7 + $0x68] sm:$0xf0]  ;;  %v48_v52 = vpack.c.bf16 %v46_v43, %v44_v42 }
   0xe   :  { %185 = vmatpush.bf16.msra.mxu0 %v866_v11  ;;  %406 = vmatpush.bf16.msra.mxu3 %v776_v20  ;;  %v870_v47 = vld [vmem:[%s1248_s3 + $0x40] sm:$0xff]  ;;  %v752_v49 = vor.u32 %v891_v41, %v751_v40  ;;  %v896_v55 = vld [vmem:[%s1249_s7 + $0x54] sm:$0xf]  ;;  %v777_v56 = vld [vmem:[%s1249_s7 + $0x58] sm:$0xf0] }
   0xf   :  { %199 = vmatpush.bf16.msra.mxu1 %v874_v12  ;;  %v898_v50 = vld [vmem:[%s1249_s7 + $0x64] sm:$0xf]  ;;  %v49_v53 = vpack.c.bf16 %v47_v45, %v45_v44  ;;  %v780_v57 = vor.u32 %v896_v55, %v777_v56  ;;  %v769_v59 = vld [vmem:[%s1249_s7 + $0x48] sm:$0xf0]  ;;  %v892_v61 = vld [vmem:[%s1249_s7 + $0x34] sm:$0xf] }
  0x10   :  { %v788_v54 = vor.u32 %v898_v50, %v785_v51  ;;  %v894_v58 = vld [vmem:[%s1249_s7 + $0x44] sm:$0xf]  ;;  %v761_v62 = vld [vmem:[%s1249_s7 + $0x38] sm:$0xf0]  ;;  %v753_v1 = vld [vmem:[%s1249_s7 + $0x28] sm:$0xf0] }
  0x11   :  { %v772_v60 = vor.u32 %v894_v58, %v769_v59  ;;  %v764_v63 = vor.u32 %v892_v61, %v761_v62  ;;  %v890_v0 = vld [vmem:[%s1249_s7 + $0x24] sm:$0xf]  ;;  %v743_v3 = vld [vmem:[%s1249_s7 + $0x10] sm:$0xf]  ;;  %v889_v4 = vld [vmem:[%s1249_s7 + $0x14] sm:$0xf0] }
  0x12   :  { %186 = vmatpush.bf16.msra.mxu0 %v865_v18  ;;  %407 = vmatpush.bf16.msra.mxu3 %v768_v26  ;;  %v756_v2 = vor.u32 %v890_v0, %v753_v1  ;;  %v888_v5 = vld [vmem:[%s1249_s7 + $0x14] sm:$0xf]  ;;  %v882_v6 = vld [vmem:[%s1250_s5 + $0x20] sm:$0xff]  ;;  %v744_v7 = vor.u32 %v889_v4, %v743_v3  ;;  %v745_v8 = vld [vmem:[%s1249_s7 + $0x18] sm:$0xf0] }
  0x13   :  { %200 = vmatpush.bf16.msra.mxu1 %v873_v19  ;;  %v748_v9 = vor.u32 %v888_v5, %v745_v8  ;;  %291 = vmatpush.bf16.msra.mxu2 %v882_v6  ;;  %v735_v10 = vld [vmem:[%s1249_s7] sm:$0xf]  ;;  %v887_v11 = vld [vmem:[%s1249_s7 + $0x4] sm:$0xf0]  ;;  %v886_v12 = vld [vmem:[%s1249_s7 + $0x4] sm:$0xf] }
  0x14   :  { %v881_v13 = vld [vmem:[%s1250_s5 + $0x18] sm:$0xff]  ;;  %v736_v14 = vor.u32 %v887_v11, %v735_v10  ;;  %v737_v15 = vld [vmem:[%s1249_s7 + $0x8] sm:$0xf0]  ;;  %v880_v17 = vld [vmem:[%s1250_s5 + $0x10] sm:$0xff] }
  0x15   :  { %v740_v16 = vor.u32 %v886_v12, %v737_v15  ;;  %v879_v18 = vld [vmem:[%s1250_s5 + $0x8] sm:$0xff]  ;;  %v878_v19 = vld [vmem:[%s1250_s5] sm:$0xff]  ;;  %v917_v20 = vld [vmem:[%s1254_s9 + $0x78] sm:$0xff] }
  0x16   :  { %187 = vmatpush.bf16.msra.mxu0 %v864_v24  ;;  %408 = vmatpush.bf16.msra.mxu3 %v760_v38  ;;  %v909_v21 = vld [vmem:[%s1254_s9 + $0x38] sm:$0xff]  ;;  %v916_v22 = vld [vmem:[%s1254_s9 + $0x70] sm:$0xff]  ;;  %v915_v24 = vld [vmem:[%s1254_s9 + $0x68] sm:$0xff] }
  0x17   :  { %201 = vmatpush.bf16.msra.mxu1 %v872_v25  ;;  %292 = vmatpush.bf16.msra.mxu2 %v881_v13  ;;  %v908_v23 = vld [vmem:[%s1254_s9 + $0x30] sm:$0xff]  ;;  %v907_v25 = vld [vmem:[%s1254_s9 + $0x28] sm:$0xff]  ;;  %v920_v26 = vld [vmem:[%s1251_s4] ss:$0 sm:$0xff] }
  0x18   :  { %v913_v33 = vld [vmem:[%s1254_s9 + $0x58] sm:$0xff]  ;;  %v912_v37 = vld [vmem:[%s1254_s9 + $0x50] sm:$0xff]  ;;  %v903_v50 = vld [vmem:[%s1254_s9 + $0x8] sm:$0xff] }
  0x19   :  { %v905_v34 = vld [vmem:[%s1254_s9 + $0x18] sm:$0xff]  ;;  %v902_v51 = vld [vmem:[%s1254_s9] sm:$0xff] }
  0x1a   :  { %188 = vmatpush.bf16.msra.mxu0 %v863_v27  ;;  %409 = vmatpush.bf16.msra.mxu3 %v752_v49  ;;  %v914_v27 = vld [vmem:[%s1254_s9 + $0x60] sm:$0xff] }
  0x1b   :  { %202 = vmatpush.bf16.msra.mxu1 %v871_v28  ;;  %293 = vmatpush.bf16.msra.mxu2 %v880_v17  ;;  %v906_v28 = vld [vmem:[%s1254_s9 + $0x20] sm:$0xff] }
  0x1c   :  { %v910_v49 = vld [vmem:[%s1254_s9 + $0x40] sm:$0xff] }
  0x1d   :  { %v921_v1 = vld [vmem:[%s1255_s6] ss:$0 sm:$0xff]  ;;  %s927_s6 = smov 64  }
  0x1e   :  { %189 = vmatpush.bf16.msra.mxu0 %v862_v46  ;;  %410 = vmatpush.bf16.msra.mxu3 %v744_v7  ;;  %v922_v5 = vld [vmem:[%s1256_s10] ss:$0 sm:$0xff] }
  0x1f   :  { %203 = vmatpush.bf16.msra.mxu1 %v870_v47  ;;  %294 = vmatpush.bf16.msra.mxu2 %v879_v18  ;;  %v911_v47 = vld [vmem:[%s1254_s9 + $0x48] sm:$0xff] }
  0x21   :  { %190 = vmatmul.bf16.vlgmr.msra.gmra.mxu0 %v48_v52  ;;  %v318_v52 = vld [vmem:[%s1257_s8] sm:$0x3] }
  0x22   :  { %417 = vmatpush.bf16.msrb.mxu0 %v796_v48  ;;  %204 = vmatmul.bf16.vlgmr.msra.gmra.mxu1 %v49_v53  ;;  %v904_v48 = vld [vmem:[%s1254_s9 + $0x10] sm:$0xff]  ;;  %v321_v53 = vperm.slane %v318_v52, 1 }
  0x23   :  { %411 = vmatpush.bf16.msra.mxu3 %v736_v14  ;;  %295 = vmatpush.bf16.msra.mxu2 %v878_v19 }
  0x24   :  { %566 = vmatpush.bf16.msrb.mxu1 %v909_v21 }
  0x26   :  { %418 = vmatpush.bf16.msrb.mxu0 %v788_v54 }
  0x27   :  { %579 = vmatpush.bf16.msrb.mxu2 %v917_v20 }
  0x28   :  { %567 = vmatpush.bf16.msrb.mxu1 %v908_v23 }
  0x2a   :  { %419 = vmatpush.bf16.msrb.mxu0 %v780_v57  ;;  %v320_v57 = vperm.slane %v318_v52, 0 }
  0x2b   :  { %580 = vmatpush.bf16.msrb.mxu2 %v916_v22 }
  0x2c   :  { %568 = vmatpush.bf16.msrb.mxu1 %v907_v25 }
  0x2e   :  { %420 = vmatpush.bf16.msrb.mxu0 %v772_v60 }
  0x2f   :  { %581 = vmatpush.bf16.msrb.mxu2 %v915_v24 }
  0x30   :  { %569 = vmatpush.bf16.msrb.mxu1 %v906_v28 }
  0x32   :  { %421 = vmatpush.bf16.msrb.mxu0 %v764_v63 }
  0x33   :  { %582 = vmatpush.bf16.msrb.mxu2 %v914_v27 }
  0x34   :  { %570 = vmatpush.bf16.msrb.mxu1 %v905_v34  ;;  %v928_v34 = vmov 0.0  }
  0x36   :  { %422 = vmatpush.bf16.msrb.mxu0 %v756_v2 }
  0x37   :  { %583 = vmatpush.bf16.msrb.mxu2 %v913_v33 }
  0x38   :  { %571 = vmatpush.bf16.msrb.mxu1 %v904_v48 }
  0x3a   :  { %423 = vmatpush.bf16.msrb.mxu0 %v748_v9 }
  0x3b   :  { %584 = vmatpush.bf16.msrb.mxu2 %v912_v37 }
  0x3c   :  { %572 = vmatpush.bf16.msrb.mxu1 %v903_v50 }
  0x3e   :  { %424 = vmatpush.bf16.msrb.mxu0 %v740_v16 }
  0x3f   :  { %585 = vmatpush.bf16.msrb.mxu2 %v911_v47 }
  0x40   :  { %573 = vmatpush.bf16.msrb.mxu1 %v902_v51 }
  0x43   :  { %586 = vmatpush.bf16.msrb.mxu2 %v910_v49 }
  0x9e   :  { %v191_v29 = vpop.f32.mrf.mxu0 }
  0x9f   :  { %v205_v30 = vpop.f32.mrf.mxu1  ;;  %v192_v31 = vadd.f32 %v920_v26, %v191_v29 }
  0xa1   :  { %v206_v32 = vadd.f32 %v205_v30, %v192_v31 }
  0xa3   :  { %v210_v35 = vmax.f32 %v206_v32, 0.0  ;;  %v617_v32 = vld [vmem:[%s1258_s2] sm:$0xff] }
  0xa4   :  { %vm618_vm5 = vcmp.lt.f32.partialorder %v617_v32, 0.8 }
  0xa5   :  { %v212_v36 = vpack.c.bf16 %v210_v35, %v210_v35  ;;  %v861_v35 = vsel %vm618_vm5, 1.0, %v928_v34 }
  0xa6   :  { %v193_v38 = vpop.f32.mrf.mxu0 }
  0xa7   :  { %v194_v39 = vadd.f32 %v920_v26, %v193_v38  ;;  %412 = vmatmul.bf16.vlgmr.msra.gmra.mxu3 %v212_v36  ;;  %425 = vmatmul.bf16.vlgmr.msrb.gmra.mxu0 %v212_v36  ;;  %v207_v40 = vpop.f32.mrf.mxu1  ;;  %v236_v45 = vunpack.c.l.b16 %v212_v36 }
  0xa9   :  { %v208_v41 = vadd.f32 %v207_v40, %v194_v39 }
  0xab   :  { %v211_v42 = vmax.f32 %v208_v41, 0.0 }
  0xad   :  { %v213_v43 = vpack.c.bf16 %v211_v42, %v211_v42 }
  0xaf   :  { %v237_v44 = vunpack.c.l.b16 %v213_v43 }
  0xb1   :  { %v238_v46 = vpack.c.b16 %v237_v44, %v236_v45 }
  0xb3   :  { %296 = vmatmul.bf16.vlgmr.msra.gmra.mxu2 %v238_v46 }
 0x124   :  { %v426_v54 = vpop.f32.mrf.mxu0 }
 0x125   :  { %v427_v55 = vadd.f32 %v426_v54, %v321_v53 }
 0x127   :  { %v431_v56 = vmax.f32 %v427_v55, 0.0 }
 0x129   :  { %v433_v58 = vpack.c.bf16 %v431_v56, %v431_v56 }
 0x12a   :  { %v413_v59 = vpop.f32.mrf.mxu3 }
 0x12b   :  { %v414_v60 = vadd.f32 %v413_v59, %v320_v57  ;;  %587 = vmatmul.bf16.vlgmr.msrb.gmra.mxu2 %v433_v58 }
 0x12c   :  { %v428_v61 = vpop.f32.mrf.mxu0 }
 0x12d   :  { %v430_v62 = vmax.f32 %v414_v60, 0.0 }
 0x12f   :  { %v432_v63 = vpack.c.bf16 %v430_v62, %v430_v62 }
 0x131   :  { %574 = vmatmul.bf16.vlgmr.msrb.gmra.mxu1 %v432_v63 }
 0x132   :  { %v415_v0 = vpop.f32.mrf.mxu3 }
 0x136   :  { %v297_v2 = vpop.f32.mrf.mxu2 }
 0x137   :  { %v298_v3 = vadd.f32 %v921_v1, %v297_v2 }
 0x13e   :  { %v299_v4 = vpop.f32.mrf.mxu2 }
 0x13f   :  { %v300_v30 = vadd.f32 %v921_v1, %v299_v4 }
 0x1ae   :  { %v575_v6 = vpop.f32.mrf.mxu1  ;;  %v588_v7 = vpop.f32.mrf.mxu2 }
 0x1af   :  { %v576_v8 = vadd.f32 %v922_v5, %v575_v6 }
 0x1b1   :  { %v589_v9 = vadd.f32 %v588_v7, %v576_v8 }
 0x1b3   :  { %v593_v10 = vsel %vm592_vm0, %v589_v9, -inf }
 0x1b4   :  { %594 = vmax.xlane.f32.xlu0 %v593_v10 }
 0x1b6   :  { %v577_v11 = vpop.f32.mrf.mxu1  ;;  %v590_v12 = vpop.f32.mrf.mxu2 }
 0x227   :  { %v595_v13 = vpop.xlane.xlu0 %594 }
 0x228   :  { %v596_v14 = vsub.f32 %v589_v9, %v595_v13 }
 0x22a   :  { %v597_v15 = vmul.f32 1.442695, %v596_v14 }
 0x22c   :  { %923 = vpow2.f32 %v597_v15 }
 0x232   :  { %v924_v16 = vpop.eup %923 }
 0x233   :  { %v599_v17 = vsel %vm592_vm0, %v924_v16, 0.0 }
 0x234   :  { %600 = vadd.xlane.f32.xlu0 %v599_v17 }
 0x2a7   :  { %v601_v18 = vpop.xlane.xlu0 %600 }
 0x2a8   :  { %925 = vrcp.f32 %v601_v18  ;;  %v613_v22 = vand.u32 2147483648, %v601_v18  ;;  %v611_v24 = vand.u32 2147483647, %v601_v18  ;;  %vm607_vm2 = vweird.f32 %v601_v18 }
 0x2aa   :  { %v614_v26 = vor.u32 1.1754944e-38, %v613_v22  ;;  %vm612_vm4 = vcmp.eq.f32.partialorder %v611_v24, 8.507059e+37 }
 0x2ae   :  { %v926_v19 = vpop.eup %925 }
 0x2af   :  { %v603_v20 = vmul.f32 %v926_v19, %v601_v18  ;;  %vm608_vm1 = vweird.f32 %v926_v19 }
 0x2b0   :  { %vm609_vm3 = vmor %vm607_vm2, %vm608_vm1 }
 0x2b1   :  { %v604_v21 = vsub.f32 1.0, %v603_v20 }
 0x2b3   :  { %v605_v23 = vmul.f32 %v926_v19, %v604_v21 }
 0x2b5   :  { %v606_v25 = vadd.f32 %v926_v19, %v605_v23 }
 0x2b7   :  { %v610_v27 = vsel %vm609_vm3, %v926_v19, %v606_v25 }
 0x2b8   :  { %v615_v28 = vsel %vm612_vm4, %v614_v26, %v610_v27 }
 0x2b9   :  { %v616_v29 = vmul.f32 %v924_v16, %v615_v28 }
 0x2bb   :  { %622 = vrot.lane.b32.xlu1 %v616_v29, %s927_s6 }
 0x2c3   :  { %626 = vrot.lane.b32.xlu1 %v300_v30, %s927_s6 }
 0x32d   :  { %v623_v31 = vpop.permute.xlu1 %622 }
 0x32e   :  { %v629_v33 = vsel %vm592_vm0, %v298_v3, %v623_v31 }
 0x32f   :  { %631 = vst [vmem:[%s1259_s11] sm:$0xff] %v629_v33 }
 0x335   :  { %v627_v36 = vpop.permute.xlu1 %626 }
 0x336   :  { %v630_v37 = vsel %vm592_vm0, %v861_v35, %v627_v36 }
 0x337   :  { %632 = vst [vmem:[%s1259_s11 + $0x8] sm:$0xff] %v630_v37 }

</bundles_post_ra>
